<compile_context>
chip_gen: v7x
topology: tpu7x:2x2x1
jax: 0.10.0
libtpu: 0.0.40
codegen_flags: <defaults>
</compile_context>

<pallas_src>
import functools

import numpy as np
import jax
import jax.numpy as jnp
from jax.experimental import pallas as pl
from jax.experimental.pallas import tpu as pltpu


# ----------------------------------------------------------------------------
# Parameter setup (plain numpy glue): librosa-style (slaney) mel filter bank,
# matching fairseq's get_mel_filters, followed by a pseudo-inverse.
# ----------------------------------------------------------------------------
def _hz_to_mel(f):
    f = np.asarray(f, dtype=np.float64)
    f_sp = 200.0 / 3
    mels = f / f_sp
    min_log_hz = 1000.0
    min_log_mel = min_log_hz / f_sp
    logstep = np.log(6.4) / 27.0
    return np.where(
        f >= min_log_hz,
        min_log_mel + np.log(np.maximum(f, 1e-10) / min_log_hz) / logstep,
        mels,
    )


def _mel_to_hz(mels):
    mels = np.asarray(mels, dtype=np.float64)
    f_sp = 200.0 / 3
    freqs = f_sp * mels
    min_log_hz = 1000.0
    min_log_mel = min_log_hz / f_sp
    logstep = np.log(6.4) / 27.0
    return np.where(
        mels >= min_log_mel,
        min_log_hz * np.exp(logstep * (mels - min_log_mel)),
        freqs,
    )


def get_mel_filters(sample_rate, n_fft, n_mels, f_min, f_max):
    n_freqs = n_fft // 2 + 1
    fftfreqs = np.linspace(0.0, sample_rate / 2.0, n_freqs)
    min_mel = _hz_to_mel(f_min)
    max_mel = _hz_to_mel(f_max)
    mels = np.linspace(min_mel, max_mel, n_mels + 2)
    mel_f = _mel_to_hz(mels)
    fdiff = np.diff(mel_f)
    ramps = mel_f[:, None] - fftfreqs[None, :]
    weights = np.zeros((n_mels, n_freqs), dtype=np.float64)
    for i in range(n_mels):
        lower = -ramps[i] / fdiff[i]
        upper = ramps[i + 2] / fdiff[i + 1]
        weights[i] = np.maximum(0.0, np.minimum(lower, upper))
    # slaney normalization
    enorm = 2.0 / (mel_f[2:n_mels + 2] - mel_f[:n_mels])
    weights *= enorm[:, None]
    return weights  # (n_mels, n_freqs)


def make_pinv_basis(n_stft, n_mels, sample_rate, f_min, f_max):
    basis = get_mel_filters(sample_rate, (n_stft - 1) * 2, n_mels, f_min, f_max)
    basis_pinv = np.linalg.pinv(basis)  # (n_stft, n_mels)
    return jnp.asarray(basis_pinv, dtype=jnp.float32)


# ----------------------------------------------------------------------------
# Pallas kernel: one lane-dense time tile of  relu(basis @ [exp](mel))
#   basis_ref: (freq, n_mels)   mel_ref: (n_mels, TILE)   out_ref: (freq, TILE)
# ----------------------------------------------------------------------------
def _mel_inv_kernel(basis_ref, mel_ref, out_ref, *, apply_exp, precision):
    mel = mel_ref[...]
    if apply_exp:
        mel = jnp.exp(mel)  # fused vocoder-front exp (EUP slot, free here)
    spec = jnp.dot(
        basis_ref[...],
        mel,
        preferred_element_type=jnp.float32,
        precision=precision,
    )
    out_ref[...] = jnp.maximum(spec, 0.0).astype(out_ref.dtype)


def _round_up(x, m):
    return ((x + m - 1) // m) * m


def _pick_time_tile(time, batch, time_tile):
    """Time tile must be a multiple of 128, or equal to the full time extent."""
    if time <= time_tile:
        tile = time
        # v7x has two TensorCores: if batch alone doesn't give >=2 parallel
        # grid steps, split the time axis into (at least) two tiles.
        if batch < 2 and time > 128:
            tile = _round_up(pl.cdiv(time, 2), 128)
        return tile
    assert time_tile % 128 == 0, time_tile
    return time_tile


def pseudo_inverse_mel_scale(melspec, basis, *, time_tile=8192, apply_exp=False,
                             out_dtype=None,
                             precision=jax.lax.Precision.HIGHEST):
    """relu(basis @ [exp](melspec)) over the trailing (n_mels, time) dims.

    melspec: (..., n_mels, time) -> (..., freq, time).

    Batch is a grid axis and the result is written directly in its final
    (..., freq, time) layout: no wrapper-side transpose / pad / slice passes
    over the (large) output, no padding of the (small) input.
    """
    shape = melspec.shape
    n_mels, time = shape[-2], shape[-1]
    freq, n_mels_b = basis.shape
    assert n_mels_b == n_mels, (basis.shape, n_mels)
    out_dtype = melspec.dtype if out_dtype is None else out_dtype

    mel3 = melspec.reshape(-1, n_mels, time)  # (B, n_mels, time)
    B = mel3.shape[0]

    tile = _pick_time_tile(time, B, time_tile)
    n_t = pl.cdiv(time, tile)   # edge tile's store is masked by Pallas
    grid = (B, n_t)

    # Keep the ~8 KiB pinv basis in float32 (never degrade the K=16
    # contraction); constant index_map keeps it resident in VMEM.
    basis = basis.astype(jnp.float32)

    kernel = functools.partial(_mel_inv_kernel, apply_exp=apply_exp,
                               precision=precision)

    # VMEM budget: double-buffered mel + out blocks, resident basis.  Only
    # raise the scoped limit when a big tile needs it (v5e default is 16 MiB).
    in_sz = jnp.dtype(melspec.dtype).itemsize
    out_sz = jnp.dtype(out_dtype).itemsize
    vmem_bytes = (2 * (n_mels * tile * in_sz + freq * tile * out_sz)
                  + freq * n_mels * 4)
    compiler_kwargs = dict(dimension_semantics=("parallel", "parallel"))
    if vmem_bytes > 12 * 1024 * 1024:
        compiler_kwargs["vmem_limit_bytes"] = min(
            int(vmem_bytes * 1.5) + (2 << 20), 100 * 1024 * 1024)

    out3 = pl.pallas_call(
        kernel,
        out_shape=jax.ShapeDtypeStruct((B, freq, time), out_dtype),
        grid=grid,
        in_specs=[
            # ~8 KiB f32 basis, constant block index -> resident in VMEM.
            pl.BlockSpec((freq, n_mels), lambda b, j: (0, 0)),
            # (B, n_mels, time): batch dim squeezed, lane-dense time tile.
            pl.BlockSpec((None, n_mels, tile), lambda b, j: (b, 0, j)),
        ],
        # Output written directly in final (B, freq, time) layout.
        out_specs=pl.BlockSpec((None, freq, tile), lambda b, j: (b, 0, j)),
        compiler_params=pltpu.CompilerParams(**compiler_kwargs),
    )(basis, mel3)

    return out3.reshape(shape[:-2] + (freq, time))


def griffin_lim_vocoder_front(log_melspec, basis, **kwargs):
    """GriffinLimVocoder forward front-end: x.exp().transpose(-1,-2) then
    PseudoInverseMelScale (the exp is fused into the Pallas kernel).
    log_melspec: (..., time, n_mels) -> (..., freq, time)."""
    mel = jnp.swapaxes(log_melspec, -1, -2)  # (..., n_mels, time): small (n_mels rows)
    return pseudo_inverse_mel_scale(mel, basis, apply_exp=True, **kwargs)
    # TODO(synk): GriffinLim phase-reconstruction loop (STFT / ISTFT) not implemented.


if __name__ == "__main__":
    # Module hyper-parameters (small, but consistent with the module).
    n_stft = 129          # -> n_fft = 256, freq = 129
    n_mels = 16
    sample_rate = 16000
    f_min, f_max = 0.0, 8000.0

    basis = make_pinv_basis(n_stft, n_mels, sample_rate, f_min, f_max)

    # Deterministic example input: log-mel spectrogram (batch, time, n_mels),
    # as fed to GriffinLimVocoder.forward.
    key = jax.random.PRNGKey(0)
    batch, time = 2, 300
    log_mel = jax.random.uniform(
        key, (batch, time, n_mels), dtype=jnp.float32, minval=-4.0, maxval=0.0)

    # Vocoder front-end (exp fused into the kernel).
    out = griffin_lim_vocoder_front(log_mel, basis)
    out = jax.block_until_ready(out)
    assert out.shape == (batch, n_stft, time), out.shape
    assert out.dtype == log_mel.dtype

    mel = jnp.swapaxes(log_mel, -1, -2)  # (batch, n_mels, time)
    ref = jnp.maximum(
        jnp.einsum("fm,bmt->bft", basis, jnp.exp(mel),
                   precision=jax.lax.Precision.HIGHEST),
        0.0)
    np.testing.assert_allclose(np.asarray(out), np.asarray(ref),
                               rtol=1e-4, atol=1e-3)

    # Plain PseudoInverseMelScale path (no exp), as in the original module.
    out2 = jax.block_until_ready(pseudo_inverse_mel_scale(mel, basis))
    ref2 = jnp.maximum(
        jnp.einsum("fm,bmt->bft", basis, mel,
                   precision=jax.lax.Precision.HIGHEST),
        0.0)
    np.testing.assert_allclose(np.asarray(out2), np.asarray(ref2),
                               rtol=1e-4, atol=1e-3)

    # Batch=1 path: exercises the time-axis split (2 parallel grid steps for
    # v7x's second TensorCore) and the masked cdiv edge tile.
    out3 = jax.block_until_ready(
        pseudo_inverse_mel_scale(mel[:1], basis, apply_exp=True))
    ref3 = jnp.maximum(
        jnp.einsum("fm,bmt->bft", basis, jnp.exp(mel[:1]),
                   precision=jax.lax.Precision.HIGHEST),
        0.0)
    np.testing.assert_allclose(np.asarray(out3), np.asarray(ref3),
                               rtol=1e-4, atol=1e-3)

    print("KERNEL_OK")
</pallas_src>

<mosaic_0001>
module attributes {stable_mosaic.version = 11 : i64} {
  func.func @_mel_inv_kernel(%arg0: i32, %arg1: i32, %arg2: memref<129x16xf32, #tpu.memory_space<vmem>>, %arg3: memref<1x16x300xf32, #tpu.memory_space<vmem>>, %arg4: memref<1x129x300xf32, #tpu.memory_space<vmem>>) attributes {dimension_semantics = [#tpu.dimension_semantics<parallel>, #tpu.dimension_semantics<parallel>], iteration_bounds = array<i64: 2, 1>, scalar_prefetch = 0 : i64, scratch_operands = 0 : i64, tpu.core_type = #tpu.core_type<tc>, window_params = [{pipeline_mode = #tpu.pipeline_mode<synchronous>, transform_indices = @transform_0, window_bounds = array<i64: 129, 16>}, {transform_indices = @transform_1, window_bounds = array<i64: 1, 16, 300>}, {transform_indices = @transform_2, window_bounds = array<i64: 1, 129, 300>}]} {
    %c0 = arith.constant 0 : index
    %c0_0 = arith.constant 0 : index
    %c0_1 = arith.constant 0 : index
    %0 = vector.load %arg3[%c0, %c0_0, %c0_1] : memref<1x16x300xf32, #tpu.memory_space<vmem>>, vector<1x16x300xf32>
    %1 = vector.shape_cast %0 : vector<1x16x300xf32> to vector<16x300xf32>
    %2 = math.exp %1 : vector<16x300xf32>
    %c0_2 = arith.constant 0 : index
    %c0_3 = arith.constant 0 : index
    %3 = vector.load %arg2[%c0_2, %c0_3] : memref<129x16xf32, #tpu.memory_space<vmem>>, vector<129x16xf32>
    %cst = arith.constant dense<0.000000e+00> : vector<129x300xf32>
    %4 = tpu.matmul %3, %2, %cst {dimension_numbers = #tpu.dot_dimension_numbers<[1], [0], [0], [1], [0, 0, 1, 1], [], []>, precision = #tpu.contract_precision<fp32>} : vector<129x16xf32>, vector<16x300xf32>, vector<129x300xf32> -> vector<129x300xf32>
    %cst_4 = arith.constant 0.000000e+00 : f32
    %5 = vector.broadcast %cst_4 : f32 to vector<129x300xf32>
    %6 = arith.maximumf %4, %5 : vector<129x300xf32>
    %c0_5 = arith.constant 0 : index
    %c0_6 = arith.constant 0 : index
    %c0_7 = arith.constant 0 : index
    %7 = vector.load %arg4[%c0_5, %c0_6, %c0_7] : memref<1x129x300xf32, #tpu.memory_space<vmem>>, vector<1x129x300xf32>
    %8 = vector.shape_cast %7 : vector<1x129x300xf32> to vector<129x300xf32>
    %9 = vector.shape_cast %6 : vector<129x300xf32> to vector<1x129x300xf32>
    tpu.vector_store %arg4[%c0_5, %c0_6, %c0_7], %9 {strides = array<i32>} : memref<1x129x300xf32, #tpu.memory_space<vmem>>, vector<1x129x300xf32>,
    return
  }
  func.func @transform_0(%arg0: i32, %arg1: i32) -> (i32, i32) {
    %c0_i32 = arith.constant 0 : i32
    %c0_i32_0 = arith.constant 0 : i32
    %c0_i32_1 = arith.constant 0 : i32
    return %c0_i32, %c0_i32_0 : i32, i32
  }
  func.func @transform_1(%arg0: i32, %arg1: i32) -> (i32, i32, i32) {
    %c0_i32 = arith.constant 0 : i32
    %c0_i32_0 = arith.constant 0 : i32
    return %arg0, %c0_i32, %arg1 : i32, i32, i32
  }
  func.func @transform_2(%arg0: i32, %arg1: i32) -> (i32, i32, i32) {
    %c0_i32 = arith.constant 0 : i32
    %c0_i32_0 = arith.constant 0 : i32
    return %arg0, %c0_i32, %arg1 : i32, i32, i32
  }
}

</mosaic_0001>

<bundles_post_ra>
// kernel: tpu_custom_call.1
= control target key start
LH: loop header
LB: loop body
LE: loop exit
PB: predicated region body
PF: predicated region fallthrough
CT: control target
= control target key end

     0   :  { %s3801_s9 = smov 0   ;;  %s3803_s10 = smov 0   ;;  %s4710_s0 = inlined_call_operand.vmem [shape: f32[129,16], index: 0, kind: input, shape index: {}]   ;;  %s4711_s1 = inlined_call_operand.vmem [shape: f32[2,16,300], index: 1, kind: input, shape index: {}]   ;;  %s4712_s2 = inlined_call_operand.vmem [shape: f32[2,129,300], index: 2, kind: output, shape index: {}]  }
   0x1   :  { %s3805_s11 = smov 0  }
   0x2 LB: > { %s24_s12 = sadd.s32 1, %s3777_s10  ;;  %p2887_p0 = scmp.ge.s32.totalorder %s3781_s11, 1  ;;  %s3781_s11 = sphi %s3805_s11, %s12_s11   ;;  %s3777_s10 = sphi %s3803_s10, %s4743_s10   ;;  %s3773_s9 = sphi %s3801_s9, %s4742_s9  }
   0x3   : > { %p26_p1 = scmp.ge.s32.totalorder %s24_s12, 2  ;;  %p133_p2 = scmp.lt.s32.totalorder %s3781_s11, 3 }
   0x5   : > { %s4745_s12 = smov (%p26_p1, %s24_s12), 0  ;;  %p134_p3 = pnand %p2887_p0, %p133_p2 }
   0x7   : > { %137 = sbr.rel (%p134_p3) target bundleno = 666 (0x29a), region = 28 }
   0xe   : > { %p164_p4 = scmp.lt.s32.totalorder %s3773_s9, 1  ;;  %v4719_v0 = vmov 0.0|0.0   ;;  %vm3784_vm0 = vmmov 0   ;;  %v3785_v1 = vmov 0.0   ;;  %v201_v2 = vld [vmem:[%s4710_s0] sm:$0xff]  ;;  %vm218_vm1 = vcmask 130048  }
   0xf   : > { %3360 = vmatprep.subr.bf16.mxu1 %v4719_v0  ;;  %3010 = vmatprep.mubr.msk.f32.mxu1 %vm3784_vm0, %v3785_v1  ;;  %v202_v3 = vld [vmem:[%s4710_s0 + $0x8] sm:$0xff]  ;;  %v220_v7 = vsel %vm218_vm1, %v201_v2, 0  ;;  %v203_v17 = vld [vmem:[%s4710_s0 + $0x10] sm:$0xff]  ;;  %v204_v20 = vld [vmem:[%s4710_s0 + $0x18] sm:$0xff]  ;;  %vm2745_vm2 = vcmask 359424   ;;  %vm2794_vm3 = vcmask 352256  }
  0x10   : > { %s4747_s9 = smov (!%p164_p4, %s3773_s9), 1  ;;  %338 = vmatprep.mubr.f32.mxu0 %v3785_v1  ;;  %v223_v16 = vsel %vm218_vm1, %v202_v3, 0  ;;  %v3840_v19 = vand.u32 4294901760, %v220_v7  ;;  %v226_v22 = vsel %vm218_vm1, %v203_v17, 0  ;;  %v229_v24 = vsel %vm218_vm1, %v204_v20, 0  ;;  %v205_v26 = vld [vmem:[%s4710_s0 + $0x20] sm:$0xff] }
  0x11   : > { %s3718_s13 = smul.u32 48, %s4747_s9  ;;  %v3845_v21 = vand.u32 4294901760, %v223_v16  ;;  %v3852_v25 = vand.u32 4294901760, %v226_v22  ;;  %v206_v28 = vld [vmem:[%s4710_s0 + $0x28] sm:$0xff]  ;;  %v3863_v29 = vand.u32 4294901760, %v229_v24  ;;  %v232_v31 = vsel %vm218_vm1, %v205_v26, 0 }
  0x12   : > { %v3849_v23 = vsub.f32 %v220_v7, %v3840_v19  ;;  %v207_v32 = vld [vmem:[%s4710_s0 + $0x30] sm:$0xff]  ;;  %v3876_v35 = vsel %vm218_vm1, %v206_v28, 0  ;;  %v3884_v42 = vand.u32 4294901760, %v232_v31  ;;  %s3719_s27 = smul.u32 408, %s4747_s9 }
  0x13   : > { %s171_s18 = scalar_lea.vmem %s4711_s1, %s3718_s13  ;;  %v3858_v27 = vsub.f32 %v223_v16, %v3845_v21  ;;  %v3873_v34 = vsub.f32 %v226_v22, %v3852_v25  ;;  %v3882_v41 = vsub.f32 %v229_v24, %v3863_v29  ;;  %v3887_v43 = vsel %vm218_vm1, %v207_v32, 0 }
  0x14   : > { %v184_v4 = vld [vmem:[%s171_s18 + $0x8] sm:$0xff]  ;;  %v187_v5 = vld [vmem:[%s171_s18 + $0x20] sm:$0xff]  ;;  %v185_v6 = vld [vmem:[%s171_s18 + $0x10] sm:$0xff]  ;;  %v3866_v30 = vand.u32 4294901760, %v3849_v23  ;;  %v3894_v48 = vand.u32 4294901760, %v3876_v35  ;;  %v3956_v32 = vand.u32 4294901760, %v3887_v43  ;;  %s4632_s30 = scalar_lea.vmem %s4712_s2, %s3719_s27 }
  0x15   : > { %v191_v8 = vmul.f32 1.442695, %v184_v4  ;;  %v197_v9 = vmul.f32 1.442695, %v187_v5  ;;  %v188_v10 = vld [vmem:[%s171_s18 + $0x28] sm:$0xff]  ;;  %v183_v11 = vld [vmem:[%s171_s18] sm:$0xff] }
  0x16   : > { %v193_v12 = vmul.f32 1.442695, %v185_v6  ;;  %v199_v13 = vmul.f32 1.442695, %v188_v10  ;;  %v186_v14 = vld [vmem:[%s171_s18 + $0x18] sm:$0xff]  ;;  %v3879_v38 = vand.u32 4294901760, %v3858_v27  ;;  %v342_v47 = vsub.f32 %v3849_v23, %v3866_v30 }
  0x17   : > { %3747 = vpow2.f32 %v191_v8  ;;  %v189_v15 = vmul.f32 1.442695, %v183_v11  ;;  %v195_v18 = vmul.f32 1.442695, %v186_v14  ;;  %v3901_v53 = vand.u32 4294901760, %v3873_v34 }
  0x18   : > { %3749 = vpow2.f32 %v197_v9  ;;  %v353_v57 = vsub.f32 %v3858_v27, %v3879_v38  ;;  %v343_v2 = vand.u32 4294901760, %v342_v47  ;;  %v3948_v22 = vand.u32 4294901760, %v3882_v41 }
  0x19   : > { %3751 = vpow2.f32 %v193_v12  ;;  %v3935_v12 = vsub.f32 %v232_v31, %v3884_v42  ;;  %v364_v16 = vsub.f32 %v3873_v34, %v3901_v53 }
  0x1a   : > { %3753 = vpow2.f32 %v199_v13  ;;  %v354_v17 = vand.u32 4294901760, %v353_v57  ;;  %v3987_v57 = vsub.f32 %v3887_v43, %v3956_v32  ;;  %v210_v43 = vld [vmem:[%s4710_s0 + $0x48] sm:$0xff] }
  0x1b   : > { %3755 = vpow2.f32 %v189_v15 }
  0x1c   : > { %3757 = vpow2.f32 %v195_v18 }
  0x21   : > { %v3748_v33 = vpop.eup %3747 }
  0x22   : > { %v3750_v36 = vpop.eup %3749  ;;  %v270_v37 = vand.u32 4294901760, %v3748_v33 }
  0x23   : > { %v3752_v39 = vpop.eup %3751  ;;  %v274_v40 = vand.u32 4294901760, %v3750_v36 }
  0x24   : > { %v3754_v44 = vpop.eup %3753  ;;  %v3889_v45 = vsub.f32 %v3748_v33, %v270_v37  ;;  %v1546_v46 = vand.u32 4294901760, %v3752_v39  ;;  %v208_v33 = vld [vmem:[%s4710_s0 + $0x38] sm:$0xff] }
  0x25   : > { %v3756_v49 = vpop.eup %3755  ;;  %v3896_v50 = vpack.c.bf16 %v274_v40, %v270_v37  ;;  %v3898_v51 = vsub.f32 %v3750_v36, %v274_v40  ;;  %v1549_v52 = vand.u32 4294901760, %v3754_v44  ;;  %v3964_v40 = vsub.f32 %v3876_v35, %v3894_v48 }
  0x26   : > { %v3758_v54 = vpop.eup %3757  ;;  %v3903_v55 = vsub.f32 %v3752_v39, %v1546_v46  ;;  %v272_v56 = vand.u32 4294901760, %v3756_v49  ;;  %v4718_v58 = vand.u32 4294901760, %v3889_v45  ;;  %v365_v39 = vand.u32 4294901760, %v364_v16 }
  0x27   : > { %3337 = vmatprep.subr.bf16.mxu0 %v3896_v50  ;;  %v3909_v59 = vpack.c.bf16 %v1549_v52, %v1546_v46  ;;  %v3911_v60 = vsub.f32 %v3754_v44, %v1549_v52  ;;  %v276_v61 = vand.u32 4294901760, %v3758_v54  ;;  %v4717_v62 = vand.u32 4294901760, %v3898_v51 }
  0x28   : > { %v3914_v63 = vsub.f32 %v3756_v49, %v272_v56  ;;  %v529_v3 = vsub.f32 %v3889_v45, %v4718_v58  ;;  %v4716_v4 = vand.u32 4294901760, %v3903_v55  ;;  %v375_v44 = vsub.f32 %v3882_v41, %v3948_v22 }
  0x29   : > { %3362 = vmatpush3.bf16.msra.mxu1 %v3909_v59  ;;  %v3921_v5 = vpack.c.bf16 %v276_v61, %v272_v56  ;;  %v3923_v6 = vsub.f32 %v3758_v54, %v276_v61  ;;  %v541_v7 = vsub.f32 %v3898_v51, %v4717_v62  ;;  %v4715_v8 = vand.u32 4294901760, %v3911_v60  ;;  %v209_v54 = vld [vmem:[%s4710_s0 + $0x40] sm:$0xff] }
  0x2a   : > { %v530_v9 = vand.u32 4294901760, %v529_v3  ;;  %v4714_v10 = vand.u32 4294901760, %v3914_v63  ;;  %3363 = vmatprep.subr.bf16.mxu1 %v4719_v0  ;;  %v1786_v11 = vsub.f32 %v3903_v55, %v4716_v4  ;;  %v3969_v46 = vand.u32 4294901760, %v3935_v12 }
  0x2b   : > { %3339 = vmatpush1.bf16.msra.mxu0 %v3921_v5  ;;  %v542_v13 = vand.u32 4294901760, %v541_v7  ;;  %v4713_v14 = vand.u32 4294901760, %v3923_v6  ;;  %v1793_v15 = vsub.f32 %v3911_v60, %v4715_v8  ;;  %v3344_v47 = vpack.c.bf16 %v3898_v51, %v3889_v45 }
  0x2c   : > { %3011 = vmatmul.mubr.f32.vlgmr.msra.gmra.mrb[0].mxu1 %v343_v2  ;;  %v535_v18 = vsub.f32 %v3914_v63, %v4714_v10  ;;  %v1787_v20 = vand.u32 4294901760, %v1786_v11  ;;  %v241_v35 = vsel %vm218_vm1, %v208_v33, 0  ;;  %v376_v61 = vand.u32 4294901760, %v375_v44 }
  0x2d   : > { %3013 = vmatprep.mubr.msk.f32.mxu1 %vm3784_vm0, %v3785_v1  ;;  %v3340_v24 = vpack.c.bf16 %v542_v13, %v530_v9  ;;  %v547_v26 = vsub.f32 %v3923_v6, %v4713_v14  ;;  %v1794_v28 = vand.u32 4294901760, %v1793_v15  ;;  %v3992_v3 = vand.u32 4294901760, %v3964_v40 }
  0x2e   : > { %344 = vmatmul.mubr.f32.vlgmr.msra.gmra.mrb[0].mxu0 %v343_v2  ;;  %v536_v31 = vand.u32 4294901760, %v535_v18  ;;  %v386_v2 = vsub.f32 %v3935_v12, %v3969_v46  ;;  %v3994_v7 = vand.u32 4294901760, %v241_v35  ;;  %v244_v9 = vsel %vm218_vm1, %v209_v54, 0 }
  0x2f   : > { %349 = vmatprep.mubr.f32.mxu0 %v3785_v1  ;;  %3341 = vmatprep.subr.bf16.mxu0 %v3340_v24  ;;  %v548_v36 = vand.u32 4294901760, %v547_v26  ;;  %v3364_v37 = vpack.c.bf16 %v1794_v28, %v1787_v20  ;;  %v4004_v11 = vand.u32 4294901760, %v3987_v57  ;;  %v397_v15 = vsub.f32 %v3964_v40, %v3992_v3  ;;  %v211_v20 = vld [vmem:[%s4710_s0 + $0x50] sm:$0xff] }
  0x30   : > { %3014 = vmatmul.mubr.f32.gmra.mrb[2].mxu1 %v354_v17  ;;  %v387_v13 = vand.u32 4294901760, %v386_v2  ;;  %v4009_v16 = vsub.f32 %v241_v35, %v3994_v7  ;;  %v247_v18 = vsel %vm218_vm1, %v210_v43, 0 }
  0x31   : > { %v3342_v52 = vpack.c.bf16 %v548_v36, %v536_v31  ;;  %3016 = vmatprep.mubr.msk.f32.mxu1 %vm3784_vm0, %v3785_v1  ;;  %3365 = vmatpush3.bf16.msra.mxu1 %v3364_v37  ;;  %v408_v24 = vsub.f32 %v3987_v57, %v4004_v11  ;;  %v398_v26 = vand.u32 4294901760, %v397_v15  ;;  %v4028_v33 = vand.u32 4294901760, %v247_v18  ;;  %v212_v36 = vld [vmem:[%s4710_s0 + $0x58] sm:$0xff] }
  0x32   : > { %355 = vmatmul.mubr.f32.gmra.mrb[2].mxu0 %v354_v17  ;;  %3366 = vmatprep.subr.bf16.mxu1 %v4719_v0  ;;  %v4011_v17 = vand.u32 4294901760, %v244_v9  ;;  %v4023_v28 = vand.u32 4294901760, %v4009_v16  ;;  %v250_v37 = vsel %vm218_vm1, %v211_v20, 0  ;;  %v253_v44 = vsel %vm218_vm1, %v212_v36, 0  ;;  %v214_v20 = vld [vmem:[%s4710_s0 + $0x68] sm:$0xff] }
  0x33   : > { %3343 = vmatpush1.bf16.msra.mxu0 %v3342_v52  ;;  %360 = vmatprep.mubr.f32.mxu0 %v3785_v1  ;;  %v4044_v35 = vsub.f32 %v247_v18, %v4028_v33  ;;  %v4046_v54 = vand.u32 4294901760, %v250_v37  ;;  %v4054_v2 = vand.u32 4294901760, %v253_v44 }
  0x34   : > { %3017 = vmatmul.mubr.f32.gmra.mrb[4].mxu1 %v365_v39  ;;  %3345 = vmatprep.subr.bf16.mxu0 %v3344_v47  ;;  %v4026_v31 = vsub.f32 %v244_v9, %v4011_v17  ;;  %v419_v47 = vsub.f32 %v4009_v16, %v4023_v28 }
  0x35   : > { %3019 = vmatprep.mubr.msk.f32.mxu1 %vm3784_vm0, %v3785_v1  ;;  %v4060_v15 = vand.u32 4294901760, %v4044_v35  ;;  %v4063_v18 = vsub.f32 %v250_v37, %v4046_v54 }
  0x36   : > { %366 = vmatmul.mubr.f32.gmra.mrb[4].mxu0 %v365_v39  ;;  %v409_v39 = vand.u32 4294901760, %v408_v24  ;;  %v4041_v52 = vand.u32 4294901760, %v4026_v31  ;;  %v420_v43 = vand.u32 4294901760, %v419_v47  ;;  %v4079_v47 = vsub.f32 %v253_v44, %v4054_v2 }
  0x37   : > { %371 = vmatprep.mubr.f32.mxu0 %v3785_v1  ;;  %v441_v36 = vsub.f32 %v4044_v35, %v4060_v15  ;;  %v4076_v37 = vand.u32 4294901760, %v4063_v18 }
  0x38   : > { %3020 = vmatmul.mubr.f32.gmra.mrb[6].mxu1 %v376_v61  ;;  %v4094_v10 = vand.u32 4294901760, %v4079_v47 }
  0x39   : > { %3022 = vmatprep.mubr.msk.f32.mxu1 %vm3784_vm0, %v3785_v1  ;;  %v442_v14 = vand.u32 4294901760, %v441_v36  ;;  %v452_v44 = vsub.f32 %v4063_v18, %v4076_v37 }
  0x3a   : > { %377 = vmatmul.mubr.f32.gmra.mrb[6].mxu0 %v376_v61  ;;  %v213_v61 = vld [vmem:[%s4710_s0 + $0x60] sm:$0xff]  ;;  %4727 = vst [vmem:[#allocation2_spill] sm:$0xff] %v4094_v10  ;;  %v463_v4 = vsub.f32 %v4079_v47, %v4094_v10 }
  0x3b   : > { %382 = vmatprep.mubr.f32.mxu0 %v3785_v1  ;;  %v256_v9 = vsel %vm218_vm1, %v213_v61, 0  ;;  %v215_v61 = vld [vmem:[%s4710_s0 + $0x70] sm:$0xff]  ;;  %v453_v36 = vand.u32 4294901760, %v452_v44 }
  0x3c   : > { %3023 = vmatmul.mubr.f32.gmra.mrb[8].mxu1 %v387_v13  ;;  %v4071_v24 = vand.u32 4294901760, %v256_v9 }
  0x3d   : > { %3025 = vmatprep.mubr.msk.f32.mxu1 %vm3784_vm0, %v3785_v1 }
  0x3e   : > { %388 = vmatmul.mubr.f32.gmra.mrb[8].mxu0 %v387_v13  ;;  %v430_v13 = vsub.f32 %v4026_v31, %v4041_v52 }
  0x3f   : > { %393 = vmatprep.mubr.f32.mxu0 %v3785_v1 }
  0x40   : > { %3026 = vmatmul.mubr.f32.gmra.mrb[10].mxu1 %v398_v26 }
  0x41   : > { %3028 = vmatprep.mubr.msk.f32.mxu1 %vm3784_vm0, %v3785_v1 }
  0x42   : > { %399 = vmatmul.mubr.f32.gmra.mrb[10].mxu0 %v398_v26  ;;  %v431_v26 = vand.u32 4294901760, %v430_v13  ;;  %v4089_v13 = vsub.f32 %v256_v9, %v4071_v24  ;;  %v216_v9 = vld [vmem:[%s4710_s0 + $0x78] sm:$0xff] }
  0x43   : > { %404 = vmatprep.mubr.f32.mxu0 %v3785_v1 }
  0x44   : > { %3029 = vmatmul.mubr.f32.gmra.mrb[12].mxu1 %v409_v39 }
  0x45   : > { %3031 = vmatprep.mubr.msk.f32.mxu1 %vm3784_vm0, %v3785_v1 }
  0x46   : > { %410 = vmatmul.mubr.f32.gmra.mrb[12].mxu0 %v409_v39  ;;  %v259_v39 = vsel %vm218_vm1, %v214_v20, 0  ;;  %v4106_v20 = vand.u32 4294901760, %v4089_v13 }
  0x47   : > { %415 = vmatprep.mubr.f32.mxu0 %v3785_v1  ;;  %v4096_v8 = vand.u32 4294901760, %v259_v39 }
  0x48   : > { %3032 = vmatmul.mubr.f32.gmra.mrb[14].mxu1 %v420_v43  ;;  %4728 = vst [vmem:[#allocation3_spill] sm:$0xff] %v4106_v20  ;;  %v474_v44 = vsub.f32 %v4089_v13, %v4106_v20 }
  0x49   : > { %3034 = vmatprep.mubr.msk.f32.mxu1 %vm3784_vm0, %v3785_v1  ;;  %v4111_v62 = vsub.f32 %v259_v39, %v4096_v8  ;;  %v464_v39 = vand.u32 4294901760, %v463_v4 }
  0x4a   : > { %421 = vmatmul.mubr.f32.gmra.mrb[14].mxu0 %v420_v43  ;;  %v262_v43 = vsel %vm218_vm1, %v215_v61, 0  ;;  %v217_v61 = vld [vmem:[%s4710_s0 + $0x80] sm:$0x1] }
  0x4b   : > { %426 = vmatprep.mubr.f32.mxu0 %v3785_v1  ;;  %v4113_v58 = vand.u32 4294901760, %v262_v43  ;;  %v4125_v49 = vand.u32 4294901760, %v4111_v62 }
  0x4c   : > { %3035 = vmatmul.mubr.f32.gmra.mrb[16].mxu1 %v431_v26 }
  0x4d   : > { %3037 = vmatprep.mubr.msk.f32.mxu1 %vm3784_vm0, %v3785_v1  ;;  %4729 = vst [vmem:[#allocation4_spill] sm:$0xff] %v4125_v49  ;;  %v4128_v0 = vsub.f32 %v262_v43, %v4113_v58  ;;  %v485_v4 = vsub.f32 %v4111_v62, %v4125_v49 }
  0x4e   : > { %432 = vmatmul.mubr.f32.gmra.mrb[16].mxu0 %v431_v26  ;;  %v265_v26 = vsel %vm218_vm1, %v216_v9, 0  ;;  %v475_v9 = vand.u32 4294901760, %v474_v44 }
  0x4f   : > { %437 = vmatprep.mubr.f32.mxu0 %v3785_v1  ;;  %v4130_v56 = vand.u32 4294901760, %v265_v26  ;;  %v4139_v20 = vand.u32 4294901760, %v4128_v0 }
  0x50   : > { %3038 = vmatmul.mubr.f32.gmra.mrb[18].mxu1 %v442_v14 }
  0x51   : > { %3040 = vmatprep.mubr.msk.f32.mxu1 %vm3784_vm0, %v3785_v1  ;;  %v4142_v43 = vsub.f32 %v265_v26, %v4130_v56 }
  0x52   : > { %443 = vmatmul.mubr.f32.gmra.mrb[18].mxu0 %v442_v14  ;;  %v268_v14 = vsel %vm218_vm1, %v217_v61, 0  ;;  %v496_v61 = vsub.f32 %v4128_v0, %v4139_v20 }
  0x53   : > { %448 = vmatprep.mubr.f32.mxu0 %v3785_v1  ;;  %v4144_v10 = vand.u32 4294901760, %v268_v14  ;;  %v4152_v44 = vand.u32 4294901760, %v4142_v43 }
  0x54   : > { %3041 = vmatmul.mubr.f32.gmra.mrb[20].mxu1 %v453_v36  ;;  %v497_v26 = vand.u32 4294901760, %v496_v61 }
  0x55   : > { %3043 = vmatprep.mubr.msk.f32.mxu1 %vm3784_vm0, %v3785_v1  ;;  %v4155_v49 = vsub.f32 %v268_v14, %v4144_v10 }
  0x56   : > { %454 = vmatmul.mubr.f32.gmra.mrb[20].mxu0 %v453_v36  ;;  %v486_v36 = vand.u32 4294901760, %v485_v4 }
  0x57   : > { %459 = vmatprep.mubr.f32.mxu0 %v3785_v1  ;;  %v4163_v4 = vand.u32 4294901760, %v4155_v49 }
  0x58   : > { %3044 = vmatmul.mubr.f32.gmra.mrb[22].mxu1 %v464_v39 }
  0x59   : > { %3046 = vmatprep.mubr.msk.f32.mxu1 %vm3784_vm0, %v3785_v1 }
  0x5a   : > { %465 = vmatmul.mubr.f32.gmra.mrb[22].mxu0 %v464_v39  ;;  %v507_v39 = vsub.f32 %v4142_v43, %v4152_v44 }
  0x5b   : > { %470 = vmatprep.mubr.f32.mxu0 %v3785_v1 }
  0x5c   : > { %3047 = vmatmul.mubr.f32.gmra.mrb[24].mxu1 %v475_v9  ;;  %v508_v14 = vand.u32 4294901760, %v507_v39  ;;  %v4732_v39 = vpack.c.bf16 %v3923_v6, %v3914_v63 }
  0x5d   : > { %3049 = vmatprep.mubr.msk.f32.mxu1 %vm3784_vm0, %v3785_v1 }
  0x5e   : > { %476 = vmatmul.mubr.f32.gmra.mrb[24].mxu0 %v475_v9  ;;  %v518_v9 = vsub.f32 %v4155_v49, %v4163_v4 }
  0x5f   : > { %481 = vmatprep.mubr.f32.mxu0 %v3785_v1 }
  0x60   : > { %3050 = vmatmul.mubr.f32.gmra.mrb[26].mxu1 %v486_v36  ;;  %v519_v61 = vand.u32 4294901760, %v518_v9  ;;  %v4734_v9 = vand.u32 4294901760, %v3898_v51 }
  0x61   : > { %3052 = vmatprep.mubr.msk.f32.mxu1 %vm3784_vm0, %v3785_v1 }
  0x62   : > { %487 = vmatmul.mubr.f32.gmra.mrb[26].mxu0 %v486_v36  ;;  %v4730_v36 = vpack.c.bf16 %v3911_v60, %v3903_v55 }
  0x63   : > { %492 = vmatprep.mubr.f32.mxu0 %v3785_v1 }
  0x64   : > { %3053 = vmatmul.mubr.f32.gmra.mrb[28].mxu1 %v497_v26 }
  0x65   : > { %3055 = vmatprep.mubr.msk.f32.mxu1 %vm3784_vm0, %v3785_v1 }
  0x66   : > { %498 = vmatmul.mubr.f32.gmra.mrb[28].mxu0 %v497_v26  ;;  %v4731_v26 = vmov 0.0|0.0  }
  0x67   : > { %503 = vmatprep.mubr.f32.mxu0 %v3785_v1 }
  0x68   : > { %3056 = vmatmul.mubr.f32.gmra.mrb[30].mxu1 %v508_v14 }
  0x69   : > { %3058 = vmatprep.mubr.msk.f32.mxu1 %vm3784_vm0, %v3785_v1 }
  0x6a   : > { %509 = vmatmul.mubr.f32.gmra.mrb[30].mxu0 %v508_v14  ;;  %v4733_v14 = vand.u32 4294901760, %v3889_v45 }
  0x6b   : > { %514 = vmatprep.mubr.f32.mxu0 %v3785_v1 }
  0x6c   : > { %3059 = vmatmul.mubr.f32.gmra.mrb[32].mxu1 %v519_v61 }
  0x6d   : > { %3065 = vmatprep.mubr.msk.f32.mxu1 %vm3784_vm0, %v3785_v1 }
  0x6e   : > { %520 = vmatmul.mubr.f32.gmra.mrb[32].mxu0 %v519_v61  ;;  %v3352_v61 = vpack.c.bf16 %v4734_v9, %v4733_v14 }
  0x6f   : > { %610 = vmatprep.mubr.f32.mxu0 %v3785_v1 }
  0x70   : > { %3066 = vmatmul.mubr.f32.vlgmr.msra.gmra.mrb[0].mxu1 %v3840_v19 }
  0x71   : > { %3068 = vmatprep.mubr.msk.f32.mxu1 %vm3784_vm0, %v3785_v1  ;;  %3368 = vmatpush3.bf16.msra.mxu1 %v4730_v36 }
  0x72   : > { %612 = vmatmul.mubr.f32.vlgmr.msra.gmra.mrb[0].mxu0 %v3840_v19  ;;  %3369 = vmatprep.subr.bf16.mxu1 %v4731_v26 }
  0x73   : > { %617 = vmatprep.mubr.f32.mxu0 %v3785_v1  ;;  %3347 = vmatpush1.bf16.msra.mxu0 %v4732_v39 }
  0x74   : > { %3069 = vmatmul.mubr.f32.gmra.mrb[2].mxu1 %v3845_v21  ;;  %3349 = vmatprep.subr.bf16.mxu0 %v3896_v50 }
  0x75   : > { %3071 = vmatprep.mubr.msk.f32.mxu1 %vm3784_vm0, %v3785_v1 }
  0x76   : > { %619 = vmatmul.mubr.f32.gmra.mrb[2].mxu0 %v3845_v21 }
  0x77   : > { %624 = vmatprep.mubr.f32.mxu0 %v3785_v1 }
  0x78   : > { %3072 = vmatmul.mubr.f32.gmra.mrb[4].mxu1 %v3852_v25 }
  0x79   : > { %3074 = vmatprep.mubr.msk.f32.mxu1 %vm3784_vm0, %v3785_v1 }
  0x7a   : > { %626 = vmatmul.mubr.f32.gmra.mrb[4].mxu0 %v3852_v25 }
  0x7b   : > { %631 = vmatprep.mubr.f32.mxu0 %v3785_v1 }
  0x7c   : > { %3075 = vmatmul.mubr.f32.gmra.mrb[6].mxu1 %v3863_v29 }
  0x7d   : > { %3077 = vmatprep.mubr.msk.f32.mxu1 %vm3784_vm0, %v3785_v1 }
  0x7e   : > { %633 = vmatmul.mubr.f32.gmra.mrb[6].mxu0 %v3863_v29 }
  0x7f   : > { %638 = vmatprep.mubr.f32.mxu0 %v3785_v1 }
  0x80   : > { %3078 = vmatmul.mubr.f32.gmra.mrb[8].mxu1 %v3884_v42 }
  0x81   : > { %3080 = vmatprep.mubr.msk.f32.mxu1 %vm3784_vm0, %v3785_v1 }
  0x82   : > { %640 = vmatmul.mubr.f32.gmra.mrb[8].mxu0 %v3884_v42 }
  0x83   : > { %645 = vmatprep.mubr.f32.mxu0 %v3785_v1 }
  0x84   : > { %3081 = vmatmul.mubr.f32.gmra.mrb[10].mxu1 %v3894_v48 }
  0x85   : > { %3083 = vmatprep.mubr.msk.f32.mxu1 %vm3784_vm0, %v3785_v1 }
  0x86   : > { %647 = vmatmul.mubr.f32.gmra.mrb[10].mxu0 %v3894_v48 }
  0x87   : > { %652 = vmatprep.mubr.f32.mxu0 %v3785_v1 }
  0x88   : > { %3084 = vmatmul.mubr.f32.gmra.mrb[12].mxu1 %v3956_v32 }
  0x89   : > { %3086 = vmatprep.mubr.msk.f32.mxu1 %vm3784_vm0, %v3785_v1 }
  0x8a   : > { %654 = vmatmul.mubr.f32.gmra.mrb[12].mxu0 %v3956_v32 }
  0x8b   : > { %659 = vmatprep.mubr.f32.mxu0 %v3785_v1 }
  0x8c   : > { %3087 = vmatmul.mubr.f32.gmra.mrb[14].mxu1 %v3994_v7 }
  0x8d   : > { %3089 = vmatprep.mubr.msk.f32.mxu1 %vm3784_vm0, %v3785_v1 }
  0x8e   : > { %661 = vmatmul.mubr.f32.gmra.mrb[14].mxu0 %v3994_v7 }
  0x8f   : > { %666 = vmatprep.mubr.f32.mxu0 %v3785_v1 }
  0x90   : > { %3090 = vmatmul.mubr.f32.gmra.mrb[16].mxu1 %v4011_v17 }
  0x91   : > { %3092 = vmatprep.mubr.msk.f32.mxu1 %vm3784_vm0, %v3785_v1 }
  0x92   : > { %668 = vmatmul.mubr.f32.gmra.mrb[16].mxu0 %v4011_v17 }
  0x93   : > { %673 = vmatprep.mubr.f32.mxu0 %v3785_v1 }
  0x94   : > { %3093 = vmatmul.mubr.f32.gmra.mrb[18].mxu1 %v4028_v33 }
  0x95   : > { %3095 = vmatprep.mubr.msk.f32.mxu1 %vm3784_vm0, %v3785_v1 }
  0x96   : > { %675 = vmatmul.mubr.f32.gmra.mrb[18].mxu0 %v4028_v33 }
  0x97   : > { %680 = vmatprep.mubr.f32.mxu0 %v3785_v1 }
  0x98   : > { %3096 = vmatmul.mubr.f32.gmra.mrb[20].mxu1 %v4046_v54 }
  0x99   : > { %3098 = vmatprep.mubr.msk.f32.mxu1 %vm3784_vm0, %v3785_v1 }
  0x9a   : > { %682 = vmatmul.mubr.f32.gmra.mrb[20].mxu0 %v4046_v54 }
  0x9b   : > { %687 = vmatprep.mubr.f32.mxu0 %v3785_v1 }
  0x9c   : > { %3099 = vmatmul.mubr.f32.gmra.mrb[22].mxu1 %v4054_v2 }
  0x9d   : > { %3101 = vmatprep.mubr.msk.f32.mxu1 %vm3784_vm0, %v3785_v1 }
  0x9e   : > { %689 = vmatmul.mubr.f32.gmra.mrb[22].mxu0 %v4054_v2 }
  0x9f   : > { %694 = vmatprep.mubr.f32.mxu0 %v3785_v1 }
  0xa0   : > { %3102 = vmatmul.mubr.f32.gmra.mrb[24].mxu1 %v4071_v24 }
  0xa1   : > { %3104 = vmatprep.mubr.msk.f32.mxu1 %vm3784_vm0, %v3785_v1 }
  0xa2   : > { %696 = vmatmul.mubr.f32.gmra.mrb[24].mxu0 %v4071_v24 }
  0xa3   : > { %701 = vmatprep.mubr.f32.mxu0 %v3785_v1 }
  0xa4   : > { %3105 = vmatmul.mubr.f32.gmra.mrb[26].mxu1 %v4096_v8 }
  0xa5   : > { %3107 = vmatprep.mubr.msk.f32.mxu1 %vm3784_vm0, %v3785_v1 }
  0xa6   : > { %703 = vmatmul.mubr.f32.gmra.mrb[26].mxu0 %v4096_v8 }
  0xa7   : > { %708 = vmatprep.mubr.f32.mxu0 %v3785_v1 }
  0xa8   : > { %3108 = vmatmul.mubr.f32.gmra.mrb[28].mxu1 %v4113_v58 }
  0xa9   : > { %3110 = vmatprep.mubr.msk.f32.mxu1 %vm3784_vm0, %v3785_v1 }
  0xaa   : > { %710 = vmatmul.mubr.f32.gmra.mrb[28].mxu0 %v4113_v58 }
  0xab   : > { %715 = vmatprep.mubr.f32.mxu0 %v3785_v1 }
  0xac   : > { %3111 = vmatmul.mubr.f32.gmra.mrb[30].mxu1 %v4130_v56 }
  0xad   : > { %3113 = vmatprep.mubr.msk.f32.mxu1 %vm3784_vm0, %v3785_v1 }
  0xae   : > { %717 = vmatmul.mubr.f32.gmra.mrb[30].mxu0 %v4130_v56 }
  0xaf   : > { %722 = vmatprep.mubr.f32.mxu0 %v3785_v1 }
  0xb0   : > { %3114 = vmatmul.mubr.f32.gmra.mrb[32].mxu1 %v4144_v10 }
  0xb1   : > { %3120 = vmatprep.mubr.msk.f32.mxu1 %vm3784_vm0, %v3785_v1 }
  0xb2   : > { %724 = vmatmul.mubr.f32.gmra.mrb[32].mxu0 %v4144_v10 }
  0xb3   : > { %802 = vmatprep.mubr.f32.mxu0 %v3785_v1 }
  0xb4   : > { %3121 = vmatmul.mubr.f32.vlgmr.msra.gmra.mrb[0].mxu1 %v3849_v23 }
  0xb5   : > { %3123 = vmatprep.mubr.msk.f32.mxu1 %vm3784_vm0, %v3785_v1  ;;  %3371 = vmatpush3.bf16.msra.mxu1 %v3909_v59 }
  0xb6   : > { %805 = vmatmul.mubr.f32.vlgmr.msra.gmra.mrb[0].mxu0 %v3849_v23  ;;  %3372 = vmatprep.subr.bf16.mxu1 %v4731_v26  ;;  %v4735_v23 = vand.u32 4294901760, %v3903_v55 }
  0xb7   : > { %810 = vmatprep.mubr.f32.mxu0 %v3785_v1  ;;  %3351 = vmatpush1.bf16.msra.mxu0 %v3921_v5 }
  0xb8   : > { %3124 = vmatmul.mubr.f32.gmra.mrb[2].mxu1 %v3858_v27  ;;  %3353 = vmatprep.subr.bf16.mxu0 %v3352_v61 }
  0xb9   : > { %3126 = vmatprep.mubr.msk.f32.mxu1 %vm3784_vm0, %v3785_v1 }
  0xba   : > { %813 = vmatmul.mubr.f32.gmra.mrb[2].mxu0 %v3858_v27 }
  0xbb   : > { %818 = vmatprep.mubr.f32.mxu0 %v3785_v1 }
  0xbc   : > { %3127 = vmatmul.mubr.f32.gmra.mrb[4].mxu1 %v3873_v34 }
  0xbd   : > { %3129 = vmatprep.mubr.msk.f32.mxu1 %vm3784_vm0, %v3785_v1 }
  0xbe   : > { %821 = vmatmul.mubr.f32.gmra.mrb[4].mxu0 %v3873_v34  ;;  %v4737_v34 = vand.u32 4294901760, %v3914_v63 }
  0xbf   : > { %826 = vmatprep.mubr.f32.mxu0 %v3785_v1 }
  0xc0   : > { %3130 = vmatmul.mubr.f32.gmra.mrb[6].mxu1 %v3882_v41 }
  0xc1   : > { %3132 = vmatprep.mubr.msk.f32.mxu1 %vm3784_vm0, %v3785_v1 }
  0xc2   : > { %829 = vmatmul.mubr.f32.gmra.mrb[6].mxu0 %v3882_v41  ;;  %v4738_v41 = vand.u32 4294901760, %v3923_v6 }
  0xc3   : > { %834 = vmatprep.mubr.f32.mxu0 %v3785_v1 }
  0xc4   : > { %3133 = vmatmul.mubr.f32.gmra.mrb[8].mxu1 %v3935_v12  ;;  %v3354_v45 = vpack.c.bf16 %v4738_v41, %v4737_v34 }
  0xc5   : > { %3135 = vmatprep.mubr.msk.f32.mxu1 %vm3784_vm0, %v3785_v1 }
  0xc6   : > { %837 = vmatmul.mubr.f32.gmra.mrb[8].mxu0 %v3935_v12 }
  0xc7   : > { %842 = vmatprep.mubr.f32.mxu0 %v3785_v1 }
  0xc8   : > { %3136 = vmatmul.mubr.f32.gmra.mrb[10].mxu1 %v3964_v40 }
  0xc9   : > { %3138 = vmatprep.mubr.msk.f32.mxu1 %vm3784_vm0, %v3785_v1 }
  0xca   : > { %845 = vmatmul.mubr.f32.gmra.mrb[10].mxu0 %v3964_v40 }
  0xcb   : > { %850 = vmatprep.mubr.f32.mxu0 %v3785_v1 }
  0xcc   : > { %3139 = vmatmul.mubr.f32.gmra.mrb[12].mxu1 %v3987_v57 }
  0xcd   : > { %3141 = vmatprep.mubr.msk.f32.mxu1 %vm3784_vm0, %v3785_v1 }
  0xce   : > { %853 = vmatmul.mubr.f32.gmra.mrb[12].mxu0 %v3987_v57 }
  0xcf   : > { %858 = vmatprep.mubr.f32.mxu0 %v3785_v1 }
  0xd0   : > { %3142 = vmatmul.mubr.f32.gmra.mrb[14].mxu1 %v4009_v16 }
  0xd1   : > { %3144 = vmatprep.mubr.msk.f32.mxu1 %vm3784_vm0, %v3785_v1 }
  0xd2   : > { %861 = vmatmul.mubr.f32.gmra.mrb[14].mxu0 %v4009_v16 }
  0xd3   : > { %866 = vmatprep.mubr.f32.mxu0 %v3785_v1 }
  0xd4   : > { %3145 = vmatmul.mubr.f32.gmra.mrb[16].mxu1 %v4026_v31 }
  0xd5   : > { %3147 = vmatprep.mubr.msk.f32.mxu1 %vm3784_vm0, %v3785_v1 }
  0xd6   : > { %869 = vmatmul.mubr.f32.gmra.mrb[16].mxu0 %v4026_v31 }
  0xd7   : > { %874 = vmatprep.mubr.f32.mxu0 %v3785_v1 }
  0xd8   : > { %3148 = vmatmul.mubr.f32.gmra.mrb[18].mxu1 %v4044_v35 }
  0xd9   : > { %3150 = vmatprep.mubr.msk.f32.mxu1 %vm3784_vm0, %v3785_v1 }
  0xda   : > { %877 = vmatmul.mubr.f32.gmra.mrb[18].mxu0 %v4044_v35 }
  0xdb   : > { %882 = vmatprep.mubr.f32.mxu0 %v3785_v1 }
  0xdc   : > { %3151 = vmatmul.mubr.f32.gmra.mrb[20].mxu1 %v4063_v18 }
  0xdd   : > { %3153 = vmatprep.mubr.msk.f32.mxu1 %vm3784_vm0, %v3785_v1 }
  0xde   : > { %885 = vmatmul.mubr.f32.gmra.mrb[20].mxu0 %v4063_v18 }
  0xdf   : > { %890 = vmatprep.mubr.f32.mxu0 %v3785_v1 }
  0xe0   : > { %3154 = vmatmul.mubr.f32.gmra.mrb[22].mxu1 %v4079_v47 }
  0xe1   : > { %3156 = vmatprep.mubr.msk.f32.mxu1 %vm3784_vm0, %v3785_v1 }
  0xe2   : > { %893 = vmatmul.mubr.f32.gmra.mrb[22].mxu0 %v4079_v47 }
  0xe3   : > { %898 = vmatprep.mubr.f32.mxu0 %v3785_v1 }
  0xe4   : > { %3157 = vmatmul.mubr.f32.gmra.mrb[24].mxu1 %v4089_v13 }
  0xe5   : > { %3159 = vmatprep.mubr.msk.f32.mxu1 %vm3784_vm0, %v3785_v1 }
  0xe6   : > { %901 = vmatmul.mubr.f32.gmra.mrb[24].mxu0 %v4089_v13 }
  0xe7   : > { %906 = vmatprep.mubr.f32.mxu0 %v3785_v1 }
  0xe8   : > { %3160 = vmatmul.mubr.f32.gmra.mrb[26].mxu1 %v4111_v62 }
  0xe9   : > { %3162 = vmatprep.mubr.msk.f32.mxu1 %vm3784_vm0, %v3785_v1 }
  0xea   : > { %909 = vmatmul.mubr.f32.gmra.mrb[26].mxu0 %v4111_v62 }
  0xeb   : > { %914 = vmatprep.mubr.f32.mxu0 %v3785_v1 }
  0xec   : > { %3163 = vmatmul.mubr.f32.gmra.mrb[28].mxu1 %v4128_v0 }
  0xed   : > { %3165 = vmatprep.mubr.msk.f32.mxu1 %vm3784_vm0, %v3785_v1 }
  0xee   : > { %917 = vmatmul.mubr.f32.gmra.mrb[28].mxu0 %v4128_v0  ;;  %v4736_v0 = vand.u32 4294901760, %v3911_v60 }
  0xef   : > { %922 = vmatprep.mubr.f32.mxu0 %v3785_v1 }
  0xf0   : > { %3166 = vmatmul.mubr.f32.gmra.mrb[30].mxu1 %v4142_v43  ;;  %v3373_v27 = vpack.c.bf16 %v4736_v0, %v4735_v23 }
  0xf1   : > { %3168 = vmatprep.mubr.msk.f32.mxu1 %vm3784_vm0, %v3785_v1 }
  0xf2   : > { %925 = vmatmul.mubr.f32.gmra.mrb[30].mxu0 %v4142_v43 }
  0xf3   : > { %930 = vmatprep.mubr.f32.mxu0 %v3785_v1 }
  0xf4   : > { %3169 = vmatmul.mubr.f32.gmra.mrb[32].mxu1 %v4155_v49 }
  0xf5   : > { %3175 = vmatprep.mubr.msk.f32.mxu1 %vm3784_vm0, %v3785_v1 }
  0xf6   : > { %933 = vmatmul.mubr.f32.gmra.mrb[32].mxu0 %v4155_v49 }
  0xf7   : > { %1007 = vmatprep.mubr.f32.mxu0 %v3785_v1 }
  0xf8   : > { %3176 = vmatmul.mubr.f32.vlgmr.msra.gmra.mrb[0].mxu1 %v3866_v30 }
  0xf9   : > { %3178 = vmatprep.mubr.msk.f32.mxu1 %vm3784_vm0, %v3785_v1  ;;  %3374 = vmatpush3.bf16.msra.mxu1 %v3373_v27 }
  0xfa   : > { %1011 = vmatmul.mubr.f32.vlgmr.msra.gmra.mrb[0].mxu0 %v3866_v30  ;;  %3375 = vmatprep.subr.bf16.mxu1 %v4731_v26  ;;  %v4739_v30 = vld [vmem:[#allocation2_spill] sm:$0xff] }
  0xfb   : > { %1016 = vmatprep.mubr.f32.mxu0 %v3785_v1  ;;  %3355 = vmatpush1.bf16.msra.mxu0 %v3354_v45 }
  0xfc   : > { %3179 = vmatmul.mubr.f32.gmra.mrb[2].mxu1 %v3879_v38  ;;  %3357 = vmatprep.subr.bf16.mxu0 %v3896_v50  ;;  %v4741_v50 = vld [vmem:[#allocation4_spill] sm:$0xff] }
  0xfd   : > { %3181 = vmatprep.mubr.msk.f32.mxu1 %vm3784_vm0, %v3785_v1 }
  0xfe   : > { %1020 = vmatmul.mubr.f32.gmra.mrb[2].mxu0 %v3879_v38  ;;  %v4740_v38 = vld [vmem:[#allocation3_spill] sm:$0xff] }
  0xff   : > { %1025 = vmatprep.mubr.f32.mxu0 %v3785_v1 }
 0x100   : > { %3182 = vmatmul.mubr.f32.gmra.mrb[4].mxu1 %v3901_v53 }
 0x101   : > { %3184 = vmatprep.mubr.msk.f32.mxu1 %vm3784_vm0, %v3785_v1 }
 0x102   : > { %1029 = vmatmul.mubr.f32.gmra.mrb[4].mxu0 %v3901_v53 }
 0x103   : > { %1034 = vmatprep.mubr.f32.mxu0 %v3785_v1 }
 0x104   : > { %3185 = vmatmul.mubr.f32.gmra.mrb[6].mxu1 %v3948_v22 }
 0x105   : > { %3187 = vmatprep.mubr.msk.f32.mxu1 %vm3784_vm0, %v3785_v1 }
 0x106   : > { %1038 = vmatmul.mubr.f32.gmra.mrb[6].mxu0 %v3948_v22 }
 0x107   : > { %1043 = vmatprep.mubr.f32.mxu0 %v3785_v1 }
 0x108   : > { %3188 = vmatmul.mubr.f32.gmra.mrb[8].mxu1 %v3969_v46 }
 0x109   : > { %3190 = vmatprep.mubr.msk.f32.mxu1 %vm3784_vm0, %v3785_v1 }
 0x10a   : > { %1047 = vmatmul.mubr.f32.gmra.mrb[8].mxu0 %v3969_v46 }
 0x10b   : > { %1052 = vmatprep.mubr.f32.mxu0 %v3785_v1 }
 0x10c   : > { %3191 = vmatmul.mubr.f32.gmra.mrb[10].mxu1 %v3992_v3 }
 0x10d   : > { %3193 = vmatprep.mubr.msk.f32.mxu1 %vm3784_vm0, %v3785_v1 }
 0x10e   : > { %1056 = vmatmul.mubr.f32.gmra.mrb[10].mxu0 %v3992_v3 }
 0x10f   : > { %1061 = vmatprep.mubr.f32.mxu0 %v3785_v1 }
 0x110   : > { %3194 = vmatmul.mubr.f32.gmra.mrb[12].mxu1 %v4004_v11 }
 0x111   : > { %3196 = vmatprep.mubr.msk.f32.mxu1 %vm3784_vm0, %v3785_v1 }
 0x112   : > { %1065 = vmatmul.mubr.f32.gmra.mrb[12].mxu0 %v4004_v11 }
 0x113   : > { %1070 = vmatprep.mubr.f32.mxu0 %v3785_v1 }
 0x114   : > { %3197 = vmatmul.mubr.f32.gmra.mrb[14].mxu1 %v4023_v28 }
 0x115   : > { %3199 = vmatprep.mubr.msk.f32.mxu1 %vm3784_vm0, %v3785_v1 }
 0x116   : > { %1074 = vmatmul.mubr.f32.gmra.mrb[14].mxu0 %v4023_v28 }
 0x117   : > { %1079 = vmatprep.mubr.f32.mxu0 %v3785_v1 }
 0x118   : > { %3200 = vmatmul.mubr.f32.gmra.mrb[16].mxu1 %v4041_v52 }
 0x119   : > { %3202 = vmatprep.mubr.msk.f32.mxu1 %vm3784_vm0, %v3785_v1 }
 0x11a   : > { %1083 = vmatmul.mubr.f32.gmra.mrb[16].mxu0 %v4041_v52 }
 0x11b   : > { %1088 = vmatprep.mubr.f32.mxu0 %v3785_v1 }
 0x11c   : > { %3203 = vmatmul.mubr.f32.gmra.mrb[18].mxu1 %v4060_v15 }
 0x11d   : > { %3205 = vmatprep.mubr.msk.f32.mxu1 %vm3784_vm0, %v3785_v1 }
 0x11e   : > { %1092 = vmatmul.mubr.f32.gmra.mrb[18].mxu0 %v4060_v15 }
 0x11f   : > { %1097 = vmatprep.mubr.f32.mxu0 %v3785_v1 }
 0x120   : > { %3206 = vmatmul.mubr.f32.gmra.mrb[20].mxu1 %v4076_v37 }
 0x121   : > { %3208 = vmatprep.mubr.msk.f32.mxu1 %vm3784_vm0, %v3785_v1 }
 0x122   : > { %1101 = vmatmul.mubr.f32.gmra.mrb[20].mxu0 %v4076_v37 }
 0x123   : > { %1106 = vmatprep.mubr.f32.mxu0 %v3785_v1 }
 0x124   : > { %3209 = vmatmul.mubr.f32.gmra.mrb[22].mxu1 %v4739_v30 }
 0x125   : > { %3211 = vmatprep.mubr.msk.f32.mxu1 %vm3784_vm0, %v3785_v1 }
 0x126   : > { %1110 = vmatmul.mubr.f32.gmra.mrb[22].mxu0 %v4739_v30 }
 0x127   : > { %1115 = vmatprep.mubr.f32.mxu0 %v3785_v1 }
 0x128   : > { %3212 = vmatmul.mubr.f32.gmra.mrb[24].mxu1 %v4740_v38 }
 0x129   : > { %3214 = vmatprep.mubr.msk.f32.mxu1 %vm3784_vm0, %v3785_v1 }
 0x12a   : > { %1119 = vmatmul.mubr.f32.gmra.mrb[24].mxu0 %v4740_v38 }
 0x12b   : > { %1124 = vmatprep.mubr.f32.mxu0 %v3785_v1 }
 0x12c   : > { %3215 = vmatmul.mubr.f32.gmra.mrb[26].mxu1 %v4741_v50 }
 0x12d   : > { %3217 = vmatprep.mubr.msk.f32.mxu1 %vm3784_vm0, %v3785_v1 }
 0x12e   : > { %1128 = vmatmul.mubr.f32.gmra.mrb[26].mxu0 %v4741_v50 }
 0x12f   : > { %1133 = vmatprep.mubr.f32.mxu0 %v3785_v1 }
 0x130   : > { %3218 = vmatmul.mubr.f32.gmra.mrb[28].mxu1 %v4139_v20 }
 0x131   : > { %3220 = vmatprep.mubr.msk.f32.mxu1 %vm3784_vm0, %v3785_v1 }
 0x132   : > { %1137 = vmatmul.mubr.f32.gmra.mrb[28].mxu0 %v4139_v20 }
 0x133   : > { %1142 = vmatprep.mubr.f32.mxu0 %v3785_v1 }
 0x134   : > { %3221 = vmatmul.mubr.f32.gmra.mrb[30].mxu1 %v4152_v44 }
 0x135   : > { %3223 = vmatprep.mubr.msk.f32.mxu1 %vm3784_vm0, %v3785_v1 }
 0x136   : > { %1146 = vmatmul.mubr.f32.gmra.mrb[30].mxu0 %v4152_v44 }
 0x137   : > { %1151 = vmatprep.mubr.f32.mxu0 %v3785_v1 }
 0x138   : > { %3224 = vmatmul.mubr.f32.gmra.mrb[32].mxu1 %v4163_v4 }
 0x139   : > { %3230 = vmatprep.mubr.msk.f32.mxu1 %vm3784_vm0, %v3785_v1 }
 0x13a   : > { %1155 = vmatmul.mubr.f32.gmra.mrb[32].mxu0 %v4163_v4 }
 0x13b   : > { %1237 = vmatprep.mubr.f32.mxu0 %v3785_v1 }
 0x13c   : > { %3231 = vmatmul.mubr.f32.vlgmr.msra.gmra.mrb[0].mxu1 %v3840_v19 }
 0x13d   : > { %3233 = vmatprep.mubr.msk.f32.mxu1 %vm3784_vm0, %v3785_v1  ;;  %3377 = vmatpush3.bf16.msra.mxu1 %v3909_v59 }
 0x13e   : > { %1239 = vmatmul.mubr.f32.vlgmr.msra.gmra.mrb[0].mxu0 %v3840_v19 }
 0x13f   : > { %1244 = vmatprep.mubr.f32.mxu0 %v3785_v1  ;;  %3359 = vmatpush1.bf16.msra.mxu0 %v3921_v5 }
 0x140   : > { %3234 = vmatmul.mubr.f32.gmra.mrb[2].mxu1 %v3845_v21 }
 0x141   : > { %3236 = vmatprep.mubr.msk.f32.mxu1 %vm3784_vm0, %v3785_v1 }
 0x142   : > { %1246 = vmatmul.mubr.f32.gmra.mrb[2].mxu0 %v3845_v21 }
 0x143   : > { %1251 = vmatprep.mubr.f32.mxu0 %v3785_v1 }
 0x144   : > { %3237 = vmatmul.mubr.f32.gmra.mrb[4].mxu1 %v3852_v25 }
 0x145   : > { %3239 = vmatprep.mubr.msk.f32.mxu1 %vm3784_vm0, %v3785_v1 }
 0x146   : > { %1253 = vmatmul.mubr.f32.gmra.mrb[4].mxu0 %v3852_v25 }
 0x147   : > { %1258 = vmatprep.mubr.f32.mxu0 %v3785_v1 }
 0x148   : > { %3240 = vmatmul.mubr.f32.gmra.mrb[6].mxu1 %v3863_v29 }
 0x149   : > { %3242 = vmatprep.mubr.msk.f32.mxu1 %vm3784_vm0, %v3785_v1 }
 0x14a   : > { %1260 = vmatmul.mubr.f32.gmra.mrb[6].mxu0 %v3863_v29 }
 0x14b   : > { %1265 = vmatprep.mubr.f32.mxu0 %v3785_v1 }
 0x14c   : > { %3243 = vmatmul.mubr.f32.gmra.mrb[8].mxu1 %v3884_v42 }
 0x14d   : > { %3245 = vmatprep.mubr.msk.f32.mxu1 %vm3784_vm0, %v3785_v1 }
 0x14e   : > { %1267 = vmatmul.mubr.f32.gmra.mrb[8].mxu0 %v3884_v42 }
 0x14f   : > { %1272 = vmatprep.mubr.f32.mxu0 %v3785_v1 }
 0x150   : > { %3246 = vmatmul.mubr.f32.gmra.mrb[10].mxu1 %v3894_v48 }
 0x151   : > { %3248 = vmatprep.mubr.msk.f32.mxu1 %vm3784_vm0, %v3785_v1 }
 0x152   : > { %1274 = vmatmul.mubr.f32.gmra.mrb[10].mxu0 %v3894_v48 }
 0x153   : > { %1279 = vmatprep.mubr.f32.mxu0 %v3785_v1 }
 0x154   : > { %3249 = vmatmul.mubr.f32.gmra.mrb[12].mxu1 %v3956_v32 }
 0x155   : > { %3251 = vmatprep.mubr.msk.f32.mxu1 %vm3784_vm0, %v3785_v1 }
 0x156   : > { %1281 = vmatmul.mubr.f32.gmra.mrb[12].mxu0 %v3956_v32 }
 0x157   : > { %1286 = vmatprep.mubr.f32.mxu0 %v3785_v1 }
 0x158   : > { %3252 = vmatmul.mubr.f32.gmra.mrb[14].mxu1 %v3994_v7 }
 0x159   : > { %3254 = vmatprep.mubr.msk.f32.mxu1 %vm3784_vm0, %v3785_v1 }
 0x15a   : > { %1288 = vmatmul.mubr.f32.gmra.mrb[14].mxu0 %v3994_v7 }
 0x15b   : > { %1293 = vmatprep.mubr.f32.mxu0 %v3785_v1 }
 0x15c   : > { %3255 = vmatmul.mubr.f32.gmra.mrb[16].mxu1 %v4011_v17 }
 0x15d   : > { %3257 = vmatprep.mubr.msk.f32.mxu1 %vm3784_vm0, %v3785_v1 }
 0x15e   : > { %1295 = vmatmul.mubr.f32.gmra.mrb[16].mxu0 %v4011_v17 }
 0x15f   : > { %1300 = vmatprep.mubr.f32.mxu0 %v3785_v1 }
 0x160   : > { %3258 = vmatmul.mubr.f32.gmra.mrb[18].mxu1 %v4028_v33 }
 0x161   : > { %3260 = vmatprep.mubr.msk.f32.mxu1 %vm3784_vm0, %v3785_v1 }
 0x162   : > { %1302 = vmatmul.mubr.f32.gmra.mrb[18].mxu0 %v4028_v33 }
 0x163   : > { %1307 = vmatprep.mubr.f32.mxu0 %v3785_v1 }
 0x164   : > { %3261 = vmatmul.mubr.f32.gmra.mrb[20].mxu1 %v4046_v54 }
 0x165   : > { %3263 = vmatprep.mubr.msk.f32.mxu1 %vm3784_vm0, %v3785_v1 }
 0x166   : > { %1309 = vmatmul.mubr.f32.gmra.mrb[20].mxu0 %v4046_v54 }
 0x167   : > { %1314 = vmatprep.mubr.f32.mxu0 %v3785_v1 }
 0x168   : > { %3264 = vmatmul.mubr.f32.gmra.mrb[22].mxu1 %v4054_v2 }
 0x169   : > { %3266 = vmatprep.mubr.msk.f32.mxu1 %vm3784_vm0, %v3785_v1 }
 0x16a   : > { %1316 = vmatmul.mubr.f32.gmra.mrb[22].mxu0 %v4054_v2 }
 0x16b   : > { %1321 = vmatprep.mubr.f32.mxu0 %v3785_v1 }
 0x16c   : > { %3267 = vmatmul.mubr.f32.gmra.mrb[24].mxu1 %v4071_v24 }
 0x16d   : > { %3269 = vmatprep.mubr.msk.f32.mxu1 %vm3784_vm0, %v3785_v1 }
 0x16e   : > { %1323 = vmatmul.mubr.f32.gmra.mrb[24].mxu0 %v4071_v24 }
 0x16f   : > { %1328 = vmatprep.mubr.f32.mxu0 %v3785_v1 }
 0x170   : > { %3270 = vmatmul.mubr.f32.gmra.mrb[26].mxu1 %v4096_v8 }
 0x171   : > { %3272 = vmatprep.mubr.msk.f32.mxu1 %vm3784_vm0, %v3785_v1 }
 0x172   : > { %1330 = vmatmul.mubr.f32.gmra.mrb[26].mxu0 %v4096_v8 }
 0x173   : > { %1335 = vmatprep.mubr.f32.mxu0 %v3785_v1 }
 0x174   : > { %3273 = vmatmul.mubr.f32.gmra.mrb[28].mxu1 %v4113_v58 }
 0x175   : > { %3275 = vmatprep.mubr.msk.f32.mxu1 %vm3784_vm0, %v3785_v1 }
 0x176   : > { %1337 = vmatmul.mubr.f32.gmra.mrb[28].mxu0 %v4113_v58 }
 0x177   : > { %1342 = vmatprep.mubr.f32.mxu0 %v3785_v1 }
 0x178   : > { %3276 = vmatmul.mubr.f32.gmra.mrb[30].mxu1 %v4130_v56 }
 0x179   : > { %3278 = vmatprep.mubr.msk.f32.mxu1 %vm3784_vm0, %v3785_v1 }
 0x17a   : > { %1344 = vmatmul.mubr.f32.gmra.mrb[30].mxu0 %v4130_v56 }
 0x17b   : > { %1349 = vmatprep.mubr.f32.mxu0 %v3785_v1 }
 0x17c   : > { %3279 = vmatmul.mubr.f32.gmra.mrb[32].mxu1 %v4144_v10 }
 0x17d   : > { %3285 = vmatprep.mubr.msk.f32.mxu1 %vm3784_vm0, %v3785_v1 }
 0x17e   : > { %1351 = vmatmul.mubr.f32.gmra.mrb[32].mxu0 %v4144_v10 }
 0x17f   : > { %1425 = vmatprep.mubr.f32.mxu0 %v3785_v1 }
 0x180   : > { %3286 = vmatmul.mubr.f32.vlgmr.msra.gmra.mrb[0].mxu1 %v3840_v19 }
 0x181   : > { %3288 = vmatprep.mubr.msk.f32.mxu1 %vm3784_vm0, %v3785_v1 }
 0x182   : > { %1427 = vmatmul.mubr.f32.vlgmr.msra.gmra.mrb[0].mxu0 %v3840_v19 }
 0x183   : > { %1432 = vmatprep.mubr.f32.mxu0 %v3785_v1 }
 0x184   : > { %3289 = vmatmul.mubr.f32.gmra.mrb[2].mxu1 %v3845_v21 }
 0x185   : > { %3291 = vmatprep.mubr.msk.f32.mxu1 %vm3784_vm0, %v3785_v1 }
 0x186   : > { %1434 = vmatmul.mubr.f32.gmra.mrb[2].mxu0 %v3845_v21 }
 0x187   : > { %1439 = vmatprep.mubr.f32.mxu0 %v3785_v1 }
 0x188   : > { %3292 = vmatmul.mubr.f32.gmra.mrb[4].mxu1 %v3852_v25 }
 0x189   : > { %3294 = vmatprep.mubr.msk.f32.mxu1 %vm3784_vm0, %v3785_v1 }
 0x18a   : > { %1441 = vmatmul.mubr.f32.gmra.mrb[4].mxu0 %v3852_v25 }
 0x18b   : > { %1446 = vmatprep.mubr.f32.mxu0 %v3785_v1 }
 0x18c   : > { %3295 = vmatmul.mubr.f32.gmra.mrb[6].mxu1 %v3863_v29 }
 0x18d   : > { %3297 = vmatprep.mubr.msk.f32.mxu1 %vm3784_vm0, %v3785_v1 }
 0x18e   : > { %1448 = vmatmul.mubr.f32.gmra.mrb[6].mxu0 %v3863_v29 }
 0x18f   : > { %1453 = vmatprep.mubr.f32.mxu0 %v3785_v1 }
 0x190   : > { %3298 = vmatmul.mubr.f32.gmra.mrb[8].mxu1 %v3884_v42 }
 0x191   : > { %3300 = vmatprep.mubr.msk.f32.mxu1 %vm3784_vm0, %v3785_v1 }
 0x192   : > { %1455 = vmatmul.mubr.f32.gmra.mrb[8].mxu0 %v3884_v42 }
 0x193   : > { %1460 = vmatprep.mubr.f32.mxu0 %v3785_v1 }
 0x194   : > { %3301 = vmatmul.mubr.f32.gmra.mrb[10].mxu1 %v3894_v48 }
 0x195   : > { %3303 = vmatprep.mubr.msk.f32.mxu1 %vm3784_vm0, %v3785_v1 }
 0x196   : > { %1462 = vmatmul.mubr.f32.gmra.mrb[10].mxu0 %v3894_v48 }
 0x197   : > { %1467 = vmatprep.mubr.f32.mxu0 %v3785_v1 }
 0x198   : > { %3304 = vmatmul.mubr.f32.gmra.mrb[12].mxu1 %v3956_v32 }
 0x199   : > { %3306 = vmatprep.mubr.msk.f32.mxu1 %vm3784_vm0, %v3785_v1 }
 0x19a   : > { %1469 = vmatmul.mubr.f32.gmra.mrb[12].mxu0 %v3956_v32 }
 0x19b   : > { %1474 = vmatprep.mubr.f32.mxu0 %v3785_v1 }
 0x19c   : > { %3307 = vmatmul.mubr.f32.gmra.mrb[14].mxu1 %v3994_v7 }
 0x19d   : > { %3309 = vmatprep.mubr.msk.f32.mxu1 %vm3784_vm0, %v3785_v1 }
 0x19e   : > { %1476 = vmatmul.mubr.f32.gmra.mrb[14].mxu0 %v3994_v7 }
 0x19f   : > { %1481 = vmatprep.mubr.f32.mxu0 %v3785_v1 }
 0x1a0   : > { %3310 = vmatmul.mubr.f32.gmra.mrb[16].mxu1 %v4011_v17 }
 0x1a1   : > { %3312 = vmatprep.mubr.msk.f32.mxu1 %vm3784_vm0, %v3785_v1 }
 0x1a2   : > { %1483 = vmatmul.mubr.f32.gmra.mrb[16].mxu0 %v4011_v17 }
 0x1a3   : > { %1488 = vmatprep.mubr.f32.mxu0 %v3785_v1 }
 0x1a4   : > { %3313 = vmatmul.mubr.f32.gmra.mrb[18].mxu1 %v4028_v33 }
 0x1a5   : > { %3315 = vmatprep.mubr.msk.f32.mxu1 %vm3784_vm0, %v3785_v1 }
 0x1a6   : > { %1490 = vmatmul.mubr.f32.gmra.mrb[18].mxu0 %v4028_v33 }
 0x1a7   : > { %1495 = vmatprep.mubr.f32.mxu0 %v3785_v1 }
 0x1a8   : > { %3316 = vmatmul.mubr.f32.gmra.mrb[20].mxu1 %v4046_v54 }
 0x1a9   : > { %3318 = vmatprep.mubr.msk.f32.mxu1 %vm3784_vm0, %v3785_v1 }
 0x1aa   : > { %1497 = vmatmul.mubr.f32.gmra.mrb[20].mxu0 %v4046_v54 }
 0x1ab   : > { %1502 = vmatprep.mubr.f32.mxu0 %v3785_v1 }
 0x1ac   : > { %3319 = vmatmul.mubr.f32.gmra.mrb[22].mxu1 %v4054_v2 }
 0x1ad   : > { %3321 = vmatprep.mubr.msk.f32.mxu1 %vm3784_vm0, %v3785_v1 }
 0x1ae   : > { %1504 = vmatmul.mubr.f32.gmra.mrb[22].mxu0 %v4054_v2 }
 0x1af   : > { %1509 = vmatprep.mubr.f32.mxu0 %v3785_v1 }
 0x1b0   : > { %3322 = vmatmul.mubr.f32.gmra.mrb[24].mxu1 %v4071_v24 }
 0x1b1   : > { %3324 = vmatprep.mubr.msk.f32.mxu1 %vm3784_vm0, %v3785_v1 }
 0x1b2   : > { %1511 = vmatmul.mubr.f32.gmra.mrb[24].mxu0 %v4071_v24 }
 0x1b3   : > { %1516 = vmatprep.mubr.f32.mxu0 %v3785_v1 }
 0x1b4   : > { %3325 = vmatmul.mubr.f32.gmra.mrb[26].mxu1 %v4096_v8 }
 0x1b5   : > { %3327 = vmatprep.mubr.msk.f32.mxu1 %vm3784_vm0, %v3785_v1 }
 0x1b6   : > { %1518 = vmatmul.mubr.f32.gmra.mrb[26].mxu0 %v4096_v8 }
 0x1b7   : > { %1523 = vmatprep.mubr.f32.mxu0 %v3785_v1 }
 0x1b8   : > { %3328 = vmatmul.mubr.f32.gmra.mrb[28].mxu1 %v4113_v58 }
 0x1b9   : > { %3330 = vmatprep.mubr.msk.f32.mxu1 %vm3784_vm0, %v3785_v1 }
 0x1ba   : > { %1525 = vmatmul.mubr.f32.gmra.mrb[28].mxu0 %v4113_v58 }
 0x1bb   : > { %1530 = vmatprep.mubr.f32.mxu0 %v3785_v1 }
 0x1bc   : > { %3331 = vmatmul.mubr.f32.gmra.mrb[30].mxu1 %v4130_v56 }
 0x1bd   : > { %3333 = vmatprep.mubr.msk.f32.mxu1 %vm3784_vm0, %v3785_v1 }
 0x1be   : > { %1532 = vmatmul.mubr.f32.gmra.mrb[30].mxu0 %v4130_v56 }
 0x1bf   : > { %1537 = vmatprep.mubr.f32.mxu0 %v3785_v1 }
 0x1c0   : > { %3334 = vmatmul.mubr.f32.gmra.mrb[32].mxu1 %v4144_v10 }
 0x1c2   : > { %1539 = vmatmul.mubr.f32.gmra.mrb[32].mxu0 %v4144_v10 }
 0x253   : > { %v2592_v19 = vpop.f32.mrb[0].mxu1 }
 0x254   : > { %v2694_v21 = vmax.f32 %v2592_v19, 0.0  ;;  %v3287_v25 = vpop.f32.mrb[1].mxu1 }
 0x255   : > { %v1428_v29 = vpop.f32.mrb[0].mxu0 }
 0x256   : > { %2746 = vst.msk [vmem:[%s4632_s30 + $0x10] sm:$0xff] %vm2745_vm2, %v2694_v21  ;;  %v2692_v1 = vmax.f32 %v1428_v29, 0.0  ;;  %v1430_v42 = vpop.f32.mrb[1].mxu0 }
 0x257   : > { %v2693_v48 = vmax.f32 %v1430_v42, 0.0  ;;  %v2598_v51 = vpop.f32.mrb[2].mxu1 }
 0x258   : > { %2743 = vst [vmem:[%s4632_s30] sm:$0xff] %v2692_v1  ;;  %v2697_v53 = vmax.f32 %v2598_v51, 0.0  ;;  %v3290_v55 = vpop.f32.mrb[3].mxu1 }
 0x259   : > { %2744 = vst [vmem:[%s4632_s30 + $0x8] sm:$0xff] %v2693_v48  ;;  %v1435_v58 = vpop.f32.mrb[2].mxu0 }
 0x25a   : > { %2749 = vst.msk [vmem:[%s4632_s30 + $0x28] sm:$0xff] %vm2745_vm2, %v2697_v53  ;;  %v2695_v59 = vmax.f32 %v1435_v58, 0.0  ;;  %v1437_v60 = vpop.f32.mrb[3].mxu0 }
 0x25b   : > { %v2696_v62 = vmax.f32 %v1437_v60, 0.0  ;;  %v2604_v63 = vpop.f32.mrb[4].mxu1 }
 0x25c   : > { %2747 = vst [vmem:[%s4632_s30 + $0x18] sm:$0xff] %v2695_v59  ;;  %v2700_v5 = vmax.f32 %v2604_v63, 0.0  ;;  %v3293_v6 = vpop.f32.mrb[5].mxu1 }
 0x25d   : > { %2748 = vst [vmem:[%s4632_s30 + $0x20] sm:$0xff] %v2696_v62  ;;  %v1442_v8 = vpop.f32.mrb[4].mxu0 }
 0x25e   : > { %2752 = vst.msk [vmem:[%s4632_s30 + $0x40] sm:$0xff] %vm2745_vm2, %v2700_v5  ;;  %v2698_v10 = vmax.f32 %v1442_v8, 0.0  ;;  %v1444_v12 = vpop.f32.mrb[5].mxu0 }
 0x25f   : > { %v2699_v22 = vmax.f32 %v1444_v12, 0.0  ;;  %v2610_v32 = vpop.f32.mrb[6].mxu1 }
 0x260   : > { %2750 = vst [vmem:[%s4632_s30 + $0x30] sm:$0xff] %v2698_v10  ;;  %v2703_v40 = vmax.f32 %v2610_v32, 0.0  ;;  %v3296_v46 = vpop.f32.mrb[7].mxu1 }
 0x261   : > { %2751 = vst [vmem:[%s4632_s30 + $0x38] sm:$0xff] %v2699_v22  ;;  %v1449_v49 = vpop.f32.mrb[6].mxu0 }
 0x262   : > { %2755 = vst.msk [vmem:[%s4632_s30 + $0x58] sm:$0xff] %vm2745_vm2, %v2703_v40  ;;  %v2701_v56 = vmax.f32 %v1449_v49, 0.0  ;;  %v1451_v57 = vpop.f32.mrb[7].mxu0 }
 0x263   : > { %v2702_v3 = vmax.f32 %v1451_v57, 0.0  ;;  %v2616_v7 = vpop.f32.mrb[8].mxu1 }
 0x264   : > { %2753 = vst [vmem:[%s4632_s30 + $0x48] sm:$0xff] %v2701_v56  ;;  %v2706_v11 = vmax.f32 %v2616_v7, 0.0  ;;  %v3299_v16 = vpop.f32.mrb[9].mxu1 }
 0x265   : > { %2754 = vst [vmem:[%s4632_s30 + $0x50] sm:$0xff] %v2702_v3  ;;  %v1456_v17 = vpop.f32.mrb[8].mxu0 }
 0x266   : > { %2758 = vst.msk [vmem:[%s4632_s30 + $0x70] sm:$0xff] %vm2745_vm2, %v2706_v11  ;;  %v2704_v28 = vmax.f32 %v1456_v17, 0.0  ;;  %v1458_v31 = vpop.f32.mrb[9].mxu0 }
 0x267   : > { %v2705_v33 = vmax.f32 %v1458_v31, 0.0  ;;  %v2622_v52 = vpop.f32.mrb[10].mxu1 }
 0x268   : > { %2756 = vst [vmem:[%s4632_s30 + $0x60] sm:$0xff] %v2704_v28  ;;  %v2709_v35 = vmax.f32 %v2622_v52, 0.0  ;;  %v3302_v54 = vpop.f32.mrb[11].mxu1 }
 0x269   : > { %2757 = vst [vmem:[%s4632_s30 + $0x68] sm:$0xff] %v2705_v33  ;;  %v1463_v2 = vpop.f32.mrb[10].mxu0 }
 0x26a   : > { %2761 = vst.msk [vmem:[%s4632_s30 + $0x88] sm:$0xff] %vm2745_vm2, %v2709_v35  ;;  %v2707_v15 = vmax.f32 %v1463_v2, 0.0  ;;  %v1465_v18 = vpop.f32.mrb[11].mxu0 }
 0x26b   : > { %v2708_v24 = vmax.f32 %v1465_v18, 0.0  ;;  %v2628_v37 = vpop.f32.mrb[12].mxu1 }
 0x26c   : > { %2759 = vst [vmem:[%s4632_s30 + $0x78] sm:$0xff] %v2707_v15  ;;  %v2712_v47 = vmax.f32 %v2628_v37, 0.0  ;;  %v3305_v13 = vpop.f32.mrb[13].mxu1 }
 0x26d   : > { %2760 = vst [vmem:[%s4632_s30 + $0x80] sm:$0xff] %v2708_v24  ;;  %v1470_v20 = vpop.f32.mrb[12].mxu0 }
 0x26e   : > { %2764 = vst.msk [vmem:[%s4632_s30 + $0xa0] sm:$0xff] %vm2745_vm2, %v2712_v47  ;;  %v2710_v43 = vmax.f32 %v1470_v20, 0.0  ;;  %v1472_v44 = vpop.f32.mrb[13].mxu0 }
 0x26f   : > { %v2711_v4 = vmax.f32 %v1472_v44, 0.0  ;;  %v2634_v36 = vpop.f32.mrb[14].mxu1 }
 0x270   : > { %2762 = vst [vmem:[%s4632_s30 + $0x90] sm:$0xff] %v2710_v43  ;;  %v2715_v26 = vmax.f32 %v2634_v36, 0.0  ;;  %v3308_v39 = vpop.f32.mrb[15].mxu1 }
 0x271   : > { %2763 = vst [vmem:[%s4632_s30 + $0x98] sm:$0xff] %v2711_v4  ;;  %v1477_v14 = vpop.f32.mrb[14].mxu0 }
 0x272   : > { %2767 = vst.msk [vmem:[%s4632_s30 + $0xb8] sm:$0xff] %vm2745_vm2, %v2715_v26  ;;  %v2713_v9 = vmax.f32 %v1477_v14, 0.0  ;;  %v1479_v61 = vpop.f32.mrb[15].mxu0 }
 0x273   : > { %v2714_v23 = vmax.f32 %v1479_v61, 0.0  ;;  %v2640_v0 = vpop.f32.mrb[16].mxu1 }
 0x274   : > { %2765 = vst [vmem:[%s4632_s30 + $0xa8] sm:$0xff] %v2713_v9  ;;  %v2718_v27 = vmax.f32 %v2640_v0, 0.0  ;;  %v3311_v34 = vpop.f32.mrb[17].mxu1 }
 0x275   : > { %2766 = vst [vmem:[%s4632_s30 + $0xb0] sm:$0xff] %v2714_v23  ;;  %v1484_v41 = vpop.f32.mrb[16].mxu0 }
 0x276   : > { %2770 = vst.msk [vmem:[%s4632_s30 + $0xd0] sm:$0xff] %vm2745_vm2, %v2718_v27  ;;  %v2716_v45 = vmax.f32 %v1484_v41, 0.0  ;;  %v1486_v30 = vpop.f32.mrb[17].mxu0 }
 0x277   : > { %v2717_v38 = vmax.f32 %v1486_v30, 0.0  ;;  %v2646_v50 = vpop.f32.mrb[18].mxu1 }
 0x278   : > { %2768 = vst [vmem:[%s4632_s30 + $0xc0] sm:$0xff] %v2716_v45  ;;  %v2721_v19 = vmax.f32 %v2646_v50, 0.0  ;;  %v3314_v21 = vpop.f32.mrb[19].mxu1 }
 0x279   : > { %2769 = vst [vmem:[%s4632_s30 + $0xc8] sm:$0xff] %v2717_v38  ;;  %v1491_v25 = vpop.f32.mrb[18].mxu0 }
 0x27a   : > { %2773 = vst.msk [vmem:[%s4632_s30 + $0xe8] sm:$0xff] %vm2745_vm2, %v2721_v19  ;;  %v2719_v29 = vmax.f32 %v1491_v25, 0.0  ;;  %v1493_v1 = vpop.f32.mrb[19].mxu0 }
 0x27b   : > { %v2720_v42 = vmax.f32 %v1493_v1, 0.0  ;;  %v2652_v48 = vpop.f32.mrb[20].mxu1 }
 0x27c   : > { %2771 = vst [vmem:[%s4632_s30 + $0xd8] sm:$0xff] %v2719_v29  ;;  %v2724_v51 = vmax.f32 %v2652_v48, 0.0  ;;  %v3317_v53 = vpop.f32.mrb[21].mxu1 }
 0x27d   : > { %2772 = vst [vmem:[%s4632_s30 + $0xe0] sm:$0xff] %v2720_v42  ;;  %v1498_v55 = vpop.f32.mrb[20].mxu0 }
 0x27e   : > { %2776 = vst.msk [vmem:[%s4632_s30 + $0x100] sm:$0xff] %vm2745_vm2, %v2724_v51  ;;  %v2722_v58 = vmax.f32 %v1498_v55, 0.0  ;;  %v1500_v59 = vpop.f32.mrb[21].mxu0 }
 0x27f   : > { %v2723_v60 = vmax.f32 %v1500_v59, 0.0  ;;  %v2658_v62 = vpop.f32.mrb[22].mxu1 }
 0x280   : > { %2774 = vst [vmem:[%s4632_s30 + $0xf0] sm:$0xff] %v2722_v58  ;;  %v2727_v63 = vmax.f32 %v2658_v62, 0.0  ;;  %v3320_v5 = vpop.f32.mrb[23].mxu1 }
 0x281   : > { %2775 = vst [vmem:[%s4632_s30 + $0xf8] sm:$0xff] %v2723_v60  ;;  %v1505_v6 = vpop.f32.mrb[22].mxu0 }
 0x282   : > { %2779 = vst.msk [vmem:[%s4632_s30 + $0x118] sm:$0xff] %vm2745_vm2, %v2727_v63  ;;  %v2725_v8 = vmax.f32 %v1505_v6, 0.0  ;;  %v1507_v10 = vpop.f32.mrb[23].mxu0 }
 0x283   : > { %v2726_v12 = vmax.f32 %v1507_v10, 0.0  ;;  %v2664_v22 = vpop.f32.mrb[24].mxu1 }
 0x284   : > { %2777 = vst [vmem:[%s4632_s30 + $0x108] sm:$0xff] %v2725_v8  ;;  %v2730_v32 = vmax.f32 %v2664_v22, 0.0  ;;  %v3323_v40 = vpop.f32.mrb[25].mxu1 }
 0x285   : > { %2778 = vst [vmem:[%s4632_s30 + $0x110] sm:$0xff] %v2726_v12  ;;  %v1512_v46 = vpop.f32.mrb[24].mxu0 }
 0x286   : > { %2782 = vst.msk [vmem:[%s4632_s30 + $0x130] sm:$0xff] %vm2745_vm2, %v2730_v32  ;;  %v2728_v49 = vmax.f32 %v1512_v46, 0.0  ;;  %v1514_v56 = vpop.f32.mrb[25].mxu0 }
 0x287   : > { %v2729_v57 = vmax.f32 %v1514_v56, 0.0  ;;  %v2670_v3 = vpop.f32.mrb[26].mxu1 }
 0x288   : > { %2780 = vst [vmem:[%s4632_s30 + $0x120] sm:$0xff] %v2728_v49  ;;  %v2733_v7 = vmax.f32 %v2670_v3, 0.0  ;;  %v3326_v11 = vpop.f32.mrb[27].mxu1 }
 0x289   : > { %2781 = vst [vmem:[%s4632_s30 + $0x128] sm:$0xff] %v2729_v57  ;;  %v1519_v16 = vpop.f32.mrb[26].mxu0 }
 0x28a   : > { %2785 = vst.msk [vmem:[%s4632_s30 + $0x148] sm:$0xff] %vm2745_vm2, %v2733_v7  ;;  %v2731_v17 = vmax.f32 %v1519_v16, 0.0  ;;  %v1521_v28 = vpop.f32.mrb[27].mxu0 }
 0x28b   : > { %v2732_v31 = vmax.f32 %v1521_v28, 0.0  ;;  %v2676_v33 = vpop.f32.mrb[28].mxu1 }
 0x28c   : > { %2783 = vst [vmem:[%s4632_s30 + $0x138] sm:$0xff] %v2731_v17  ;;  %v2736_v52 = vmax.f32 %v2676_v33, 0.0  ;;  %v3329_v35 = vpop.f32.mrb[29].mxu1 }
 0x28d   : > { %2784 = vst [vmem:[%s4632_s30 + $0x140] sm:$0xff] %v2732_v31  ;;  %v1526_v54 = vpop.f32.mrb[28].mxu0 }
 0x28e   : > { %2788 = vst.msk [vmem:[%s4632_s30 + $0x160] sm:$0xff] %vm2745_vm2, %v2736_v52  ;;  %v2734_v2 = vmax.f32 %v1526_v54, 0.0  ;;  %v1528_v15 = vpop.f32.mrb[29].mxu0 }
 0x28f   : > { %v2735_v18 = vmax.f32 %v1528_v15, 0.0  ;;  %v2682_v24 = vpop.f32.mrb[30].mxu1 }
 0x290   : > { %2786 = vst [vmem:[%s4632_s30 + $0x150] sm:$0xff] %v2734_v2  ;;  %v2739_v37 = vmax.f32 %v2682_v24, 0.0  ;;  %v3332_v47 = vpop.f32.mrb[31].mxu1 }
 0x291   : > { %2787 = vst [vmem:[%s4632_s30 + $0x158] sm:$0xff] %v2735_v18  ;;  %v1533_v13 = vpop.f32.mrb[30].mxu0 }
 0x292   : > { %2791 = vst.msk [vmem:[%s4632_s30 + $0x178] sm:$0xff] %vm2745_vm2, %v2739_v37  ;;  %v2737_v20 = vmax.f32 %v1533_v13, 0.0  ;;  %v1535_v43 = vpop.f32.mrb[31].mxu0 }
 0x293   : > { %v2738_v44 = vmax.f32 %v1535_v43, 0.0  ;;  %v2688_v4 = vpop.f32.mrb[32].mxu1 }
 0x294   : > { %2789 = vst [vmem:[%s4632_s30 + $0x168] sm:$0xff] %v2737_v20  ;;  %v2742_v36 = vmax.f32 %v2688_v4, 0.0  ;;  %v3335_v26 = vpop.f32.mrb[33].mxu1 }
 0x295   : > { %2790 = vst [vmem:[%s4632_s30 + $0x170] sm:$0xff] %v2738_v44  ;;  %v1540_v39 = vpop.f32.mrb[32].mxu0 }
 0x296   : > { %2795 = vst.msk [vmem:[%s4632_s30 + $0x190] sm:$0x1] %vm2794_vm3, %v2742_v36  ;;  %v2740_v14 = vmax.f32 %v1540_v39, 0.0  ;;  %v1542_v9 = vpop.f32.mrb[33].mxu0 }
 0x297   : > { %v2741_v61 = vmax.f32 %v1542_v9, 0.0 }
 0x298   : > { %2792 = vst [vmem:[%s4632_s30 + $0x180] sm:$0x1] %v2740_v14 }
 0x299   : > { %2793 = vst [vmem:[%s4632_s30 + $0x188] sm:$0x1] %v2741_v61 }
 0x29a PF: > { %s12_s11 = sadd.s32 1, %s3781_s11   ;;  %s4742_s9 = smov %s3777_s10 }
 0x29b   : > { %p9_p5 = scmp.ge.s32.totalorder %s12_s11, 4   ;;  %s4743_s10 = smov %s4745_s12 }
 0x29d   :  { %11 = sbr.rel (!%p9_p5) target bundleno = 2 (0x2), region = 58 }

</bundles_post_ra>
